<compile_context>
chip_gen: v7x
topology: tpu7x:2x2x1
jax: 0.10.0
libtpu: 0.0.40
codegen_flags: <defaults>
</compile_context>

<pallas_src>
import jax
import jax.numpy as jnp
from jax.experimental import pallas as pl
from jax.experimental.pallas import tpu as pltpu


def _round_up(x, m):
    return ((x + m - 1) // m) * m


def _centroid_dist_kernel(x_ref, wt_ref, wsq_ref, m_ref, node_out_ref):
    x = x_ref[...].astype(jnp.float32)          # [tn, D]
    wt = wt_ref[...].astype(jnp.float32)        # [D, C_pad]  (pre-transposed, invariant)
    wsq = wsq_ref[...].astype(jnp.float32)      # [1, C_pad]  (precomputed ||w||^2, invariant)
    m = m_ref[...].astype(jnp.float32)          # [tn, 1]

    # pairwise squared Euclidean distance via ||x||^2 + ||w||^2 - 2 x.w^T (MXU).
    xx = jnp.sum(x * x, axis=-1, keepdims=True)                  # [tn, 1]
    xw = jnp.dot(x, wt, preferred_element_type=jnp.float32)      # [tn, C_pad]  MXU, no transpose
    d2 = jnp.maximum(xx + wsq - 2.0 * xw, 0.0)
    dist = jnp.sqrt(d2) * m                                      # masked distances [tn, C_pad]

    node_out_ref[...] = dist.astype(node_out_ref.dtype)


def centroid_distance(node_repr, centroid_weight, mask, *, tile_n=256):
    """node_repr [N, D], centroid_weight [C, D], mask [N, 1] ->
       (graph_centroid_dist [1, C], node_centroid_dist [1, N, C])"""
    N, D = node_repr.shape
    C, D2 = centroid_weight.shape
    assert D == D2, "embedding dims must match"

    # Lane-dense output: pad centroid axis to a multiple of 128.
    C_pad = _round_up(max(C, 1), 128)
    # Node tiling: large tiles, multiple of 8, capped at (padded) N.
    tile_n = max(8, min(_round_up(tile_n, 8), _round_up(N, 8)))
    N_pad = _round_up(N, tile_n)

    x = node_repr.astype(jnp.float32)
    m = mask.astype(jnp.float32)
    if N_pad > N:
        x = jnp.pad(x, ((0, N_pad - N), (0, 0)))
        m = jnp.pad(m, ((0, N_pad - N), (0, 0)))   # padded rows masked out

    # Hoist centroid-invariant work out of the kernel loop:
    w_pad = jnp.pad(centroid_weight.astype(jnp.float32), ((0, C_pad - C), (0, 0)))  # [C_pad, D]
    wT = w_pad.T                                                                     # [D, C_pad]
    w_sq = jnp.sum(wT * wT, axis=0, keepdims=True)                                   # [1, C_pad]

    grid = (N_pad // tile_n,)

    # VMEM budget (double-buffered inputs + output tile), with headroom;
    # clamp to 64 MiB so the same choice is valid on v7x.
    vmem_needed = 2 * 4 * (tile_n * D + tile_n * 1 + D * C_pad + C_pad + tile_n * C_pad)
    vmem_limit = int(min(max(2 * vmem_needed, 16 * 1024 * 1024), 64 * 1024 * 1024))

    node_dist_pad = pl.pallas_call(
        _centroid_dist_kernel,
        out_shape=jax.ShapeDtypeStruct((N_pad, C_pad), jnp.float32),
        grid_spec=pltpu.PrefetchScalarGridSpec(
            num_scalar_prefetch=0,
            grid=grid,
            in_specs=[
                pl.BlockSpec((tile_n, D), lambda i: (i, 0)),     # node_repr tile
                pl.BlockSpec((D, C_pad), lambda i: (0, 0)),      # all centroids, pre-transposed (invariant)
                pl.BlockSpec((1, C_pad), lambda i: (0, 0)),      # precomputed ||w||^2 (invariant)
                pl.BlockSpec((tile_n, 1), lambda i: (i, 0)),     # mask tile
            ],
            out_specs=pl.BlockSpec((tile_n, C_pad), lambda i: (i, 0)),  # lane-dense per-node distances
        ),
        compiler_params=pltpu.CompilerParams(
            dimension_semantics=("parallel",),   # no cross-tile accumulator -> megacore-friendly
            vmem_limit_bytes=vmem_limit,
        ),
    )(x, wT, w_sq, m)

    # Slice off padding; graph-level masked mean done outside the kernel.
    node_dist = node_dist_pad[:N, :C]
    mask_sum = jnp.sum(mask.astype(jnp.float32))
    graph_dist = jnp.sum(node_dist, axis=0, keepdims=True) / mask_sum

    return graph_dist, node_dist.reshape(1, N, C)


def init_centroid_embedding(key, in_feats, out_feats, irange=0.01):
    # uniform(-irange, irange) then L2 row-normalize (as in init_embed)
    w = jax.random.uniform(key, (in_feats, out_feats),
                           minval=-irange, maxval=irange, dtype=jnp.float32)
    norm = jnp.linalg.norm(w, axis=-1, keepdims=True)
    return w / jnp.maximum(norm, 1e-12)


if __name__ == "__main__":
    # in_feats = num centroids, out_feats = embed dim.
    in_feats = 16
    out_feats = 16
    node_num = 16

    key = jax.random.PRNGKey(0)
    k1, k2, k3 = jax.random.split(key, 3)

    node_repr = jax.random.normal(k1, (node_num, out_feats), dtype=jnp.float32)
    centroid_w = init_centroid_embedding(k2, in_feats, out_feats)
    mask = (jax.random.uniform(k3, (node_num, 1)) > 0.25).astype(jnp.float32)
    # ensure at least one real node so sum(mask) > 0
    mask = mask.at[0, 0].set(1.0)

    graph_dist, node_dist = centroid_distance(node_repr, centroid_w, mask)
    jax.block_until_ready((graph_dist, node_dist))

    # lightweight reference check (plain JAX)
    diff = node_repr[:, None, :] - centroid_w[None, :, :]
    ref_node = jnp.sqrt(jnp.sum(diff * diff, axis=-1))[None] * mask[None]
    ref_graph = jnp.sum(ref_node, axis=1) / jnp.sum(mask)
    assert node_dist.shape == (1, node_num, in_feats)
    assert graph_dist.shape == (1, in_feats)
    assert jnp.allclose(node_dist, ref_node, atol=1e-4), "node dist mismatch"
    assert jnp.allclose(graph_dist, ref_graph, atol=1e-4), "graph dist mismatch"

    print("KERNEL_OK")
</pallas_src>

<mosaic_0001>
module attributes {stable_mosaic.version = 11 : i64} {
  func.func @_centroid_dist_kernel(%arg0: i32, %arg1: memref<16x16xf32, #tpu.memory_space<vmem>>, %arg2: memref<16x128xf32, #tpu.memory_space<vmem>>, %arg3: memref<1x128xf32, #tpu.memory_space<vmem>>, %arg4: memref<16x1xf32, #tpu.memory_space<vmem>>, %arg5: memref<16x128xf32, #tpu.memory_space<vmem>>) attributes {dimension_semantics = [#tpu.dimension_semantics<parallel>], iteration_bounds = array<i64: 1>, scalar_prefetch = 0 : i64, scratch_operands = 0 : i64, tpu.core_type = #tpu.core_type<tc>, window_params = [{transform_indices = @transform_0, window_bounds = array<i64: 16, 16>}, {pipeline_mode = #tpu.pipeline_mode<synchronous>, transform_indices = @transform_1, window_bounds = array<i64: 16, 128>}, {pipeline_mode = #tpu.pipeline_mode<synchronous>, transform_indices = @transform_2, window_bounds = array<i64: 1, 128>}, {transform_indices = @transform_3, window_bounds = array<i64: 16, 1>}, {transform_indices = @transform_4, window_bounds = array<i64: 16, 128>}]} {
    %c0 = arith.constant 0 : index
    %c0_0 = arith.constant 0 : index
    %0 = vector.load %arg1[%c0, %c0_0] : memref<16x16xf32, #tpu.memory_space<vmem>>, vector<16x16xf32>
    %c0_1 = arith.constant 0 : index
    %c0_2 = arith.constant 0 : index
    %1 = vector.load %arg2[%c0_1, %c0_2] : memref<16x128xf32, #tpu.memory_space<vmem>>, vector<16x128xf32>
    %c0_3 = arith.constant 0 : index
    %c0_4 = arith.constant 0 : index
    %2 = vector.load %arg3[%c0_3, %c0_4] : memref<1x128xf32, #tpu.memory_space<vmem>>, vector<1x128xf32>
    %c0_5 = arith.constant 0 : index
    %c0_6 = arith.constant 0 : index
    %3 = vector.load %arg4[%c0_5, %c0_6] : memref<16x1xf32, #tpu.memory_space<vmem>>, vector<16x1xf32>
    %4 = arith.mulf %0, %0 : vector<16x16xf32>
    %cst = arith.constant dense<0.000000e+00> : vector<16xf32>
    %5 = vector.multi_reduction <add>, %4, %cst [1] : vector<16x16xf32> to vector<16xf32>
    %6 = vector.shape_cast %5 : vector<16xf32> to vector<16x1xf32>
    %cst_7 = arith.constant dense<0.000000e+00> : vector<16x128xf32>
    %7 = tpu.matmul %0, %1, %cst_7 {dimension_numbers = #tpu.dot_dimension_numbers<[1], [0], [0], [1], [0, 0, 1, 1], [], []>} : vector<16x16xf32>, vector<16x128xf32>, vector<16x128xf32> -> vector<16x128xf32>
    %8 = vector.broadcast %6 : vector<16x1xf32> to vector<16x128xf32>
    %9 = vector.broadcast %2 : vector<1x128xf32> to vector<16x128xf32>
    %10 = arith.addf %8, %9 : vector<16x128xf32>
    %cst_8 = arith.constant 2.000000e+00 : f32
    %11 = vector.broadcast %cst_8 : f32 to vector<16x128xf32>
    %12 = arith.mulf %11, %7 : vector<16x128xf32>
    %13 = arith.subf %10, %12 : vector<16x128xf32>
    %cst_9 = arith.constant 0.000000e+00 : f32
    %14 = vector.broadcast %cst_9 : f32 to vector<16x128xf32>
    %15 = arith.maximumf %13, %14 : vector<16x128xf32>
    %16 = math.sqrt %15 : vector<16x128xf32>
    %17 = vector.broadcast %3 : vector<16x1xf32> to vector<16x128xf32>
    %18 = arith.mulf %16, %17 : vector<16x128xf32>
    %c0_10 = arith.constant 0 : index
    %c0_11 = arith.constant 0 : index
    %19 = vector.load %arg5[%c0_10, %c0_11] : memref<16x128xf32, #tpu.memory_space<vmem>>, vector<16x128xf32>
    tpu.vector_store %arg5[%c0_10, %c0_11], %18 {strides = array<i32>} : memref<16x128xf32, #tpu.memory_space<vmem>>, vector<16x128xf32>,
    return
  }
  func.func @transform_0(%arg0: i32) -> (i32, i32) {
    %c0_i32 = arith.constant 0 : i32
    %c0_i32_0 = arith.constant 0 : i32
    return %arg0, %c0_i32 : i32, i32
  }
  func.func @transform_1(%arg0: i32) -> (i32, i32) {
    %c0_i32 = arith.constant 0 : i32
    %c0_i32_0 = arith.constant 0 : i32
    %c0_i32_1 = arith.constant 0 : i32
    return %c0_i32, %c0_i32_0 : i32, i32
  }
  func.func @transform_2(%arg0: i32) -> (i32, i32) {
    %c0_i32 = arith.constant 0 : i32
    %c0_i32_0 = arith.constant 0 : i32
    %c0_i32_1 = arith.constant 0 : i32
    return %c0_i32, %c0_i32_0 : i32, i32
  }
  func.func @transform_3(%arg0: i32) -> (i32, i32) {
    %c0_i32 = arith.constant 0 : i32
    %c0_i32_0 = arith.constant 0 : i32
    return %arg0, %c0_i32 : i32, i32
  }
  func.func @transform_4(%arg0: i32) -> (i32, i32) {
    %c0_i32 = arith.constant 0 : i32
    %c0_i32_0 = arith.constant 0 : i32
    return %arg0, %c0_i32 : i32, i32
  }
}

</mosaic_0001>

<bundles_post_ra>
// kernel: tpu_custom_call.1
= control target key start
LH: loop header
LB: loop body
LE: loop exit
PB: predicated region body
PF: predicated region fallthrough
CT: control target
= control target key end

     0   :  { %9 = vsyncpa [#allocation3], 0  ;;  %s344_s0 = inlined_call_operand.vmem [shape: f32[16,16], index: 0, kind: input, shape index: {}]   ;;  %s345_s1 = inlined_call_operand.hbm [shape: f32[16,128], index: 1, kind: input, shape index: {}]   ;;  %s346_s2 = inlined_call_operand.vmem [shape: f32[1,128], index: 2, kind: input, shape index: {}]   ;;  %s347_s3 = inlined_call_operand.vmem [shape: f32[16,1], index: 3, kind: input, shape index: {}]   ;;  %s348_s4 = inlined_call_operand.hbm [shape: f32[16,128], index: 4, kind: output, shape index: {}]  }
   0x1   :  { %10 = vsyncpa [#allocation4], 0  ;;  %s265_s15 = smov [#allocation2]   ;;  %s217_s19 = scalar_lea.hbm %s345_s1, 256 }
   0x2   :  { %s18_s16 = sshll.u32 %s265_s15, 4  ;;  %p218_p0 = scmp.ne.s32.totalorder %s345_s1, %s217_s19  ;;  %s19_s16 = int_to_ptr.vmem [resolvable:$true] %s18_s16 }
   0x3   :  { %p221_p1 = scmp.lt.u32.totalorder %s217_s19, %s345_s1 }
   0x5   :  { %p223_p2 = pnand %p221_p1, %p218_p0 }
   0x7   :  { %226 = shalt.err (!%p223_p2)
}
   0x8   :  { %s227_s24 = scalar_lea.vmem %s19_s16, 256  ;;  %p232_p4 = scmp.lt.s32.totalorder %s19_s16, %s19_s16 }
   0x9   :  { %p228_p3 = scmp.ne.s32.totalorder %s19_s16, %s227_s24  ;;  %p233_p5 = scmp.lt.s32.totalorder %s227_s24, %s227_s24 }
   0xb   :  { %p234_p6 = por %p233_p5, %p232_p4 }
   0xd   :  { %p235_p7 = pnand %p234_p6, %p228_p3 }
   0xf   :  { %238 = shalt.err (!%p235_p7)
}
  0x10   :  { %s266_s25 = smov 128   ;;  %s267_s26 = smov 8  }
  0x11   :  { %24 = dma.hbm_to_vmem [thread:$0]  %s345_s1, 256, %s19_s16, [#allocation3], %s266_s25, %s266_s25, %s267_s26  }
  0x12   :  { %261 = dma.done.wait [#allocation3], 256  }
  0x13   :  { %262 = vsyncadd [#allocation3], 4294967040  ;;  %v268_v0 = vmov 0   ;;  %vm41_vm0 = vcmask 130048   ;;  %v34_v1 = vld [vmem:[#allocation2] sm:$0xff]  ;;  %v35_v2 = vld [vmem:[#allocation2 + $0x8] sm:$0xff] }
  0x14   :  { %211 = vset.pattern.permute.xlu1 %v268_v0  ;;  %212 = vset.pattern.permute.xlu0 %v268_v0  ;;  %v32_v3 = vld [vmem:[%s344_s0] sm:$0xff]  ;;  %v202_v4 = vpack.c.bf16 %v35_v2, %v34_v1  ;;  %v33_v6 = vld [vmem:[%s344_s0 + $0x8] sm:$0xff] }
  0x15   :  { %v39_v5 = vmul.f32 %v32_v3, %v32_v3  ;;  %199 = vmatprep.mubr.msk.f32.mxu0 %vm41_vm0, %v32_v3  ;;  %v37_v7 = vld [vmem:[%s347_s3] sm:$0xff]  ;;  %v40_v8 = vmul.f32 %v33_v6, %v33_v6  ;;  %v38_v10 = vld [vmem:[%s347_s3 + $0x8] sm:$0xff] }
  0x16   :  { %159 = vperm.xlu1 %211, %v37_v7   ;;  %203 = vmatprep.subr.bf16.mxu0 %v202_v4  ;;  %v190_v14 = vld [vmem:[%s346_s2] ss:$0 sm:$0xff]  ;;  %s269_s2 = smov [#allocation5]  }
  0x17   :  { %v42_v9 = vsel %vm41_vm0, %v39_v5, 0.0  ;;  %205 = vmatpush3.bf16.msra.mxu0 %v202_v4  ;;  %v45_v11 = vsel %vm41_vm0, %v40_v8, 0.0  ;;  %s176_s3 = sshll.u32 %s269_s2, 4  ;;  %s177_s3 = int_to_ptr.vmem [resolvable:$true] %s176_s3 }
  0x18   :  { %43 = vadd.xlane.f32.xlu0 %v42_v9  ;;  %s239_s11 = scalar_lea.vmem %s177_s3, 256  ;;  %p244_p9 = scmp.lt.s32.totalorder %s177_s3, %s177_s3 }
  0x19   :  { %p240_p8 = scmp.ne.s32.totalorder %s177_s3, %s239_s11  ;;  %p245_p10 = scmp.lt.s32.totalorder %s239_s11, %s239_s11 }
  0x1a   :  { %164 = vperm.xlu1 %211, %v38_v10   ;;  %200 = vmatmul.mubr.msk.f32.vlgmr.msra.gmra.mrb[0].mxu0 %vm41_vm0, %v33_v6 }
  0x1b   :  { %p246_p11 = por %p245_p10, %p244_p9 }
  0x1c   :  { %46 = vadd.xlane.f32.xlu0 %v45_v11 }
  0x1d   :  { %p247_p12 = pnand %p246_p11, %p240_p8 }
  0x95   :  { %v160_v25 = vpop.permute.xlu1 %159 }
  0x99   :  { %v165_v34 = vpop.permute.xlu1 %164 }
  0xa5   :  { %v44_v12 = vpop.xlane.xlu0 %43 }
  0xa6   :  { %v135_v19 = vadd.f32 %v190_v14, %v44_v12 }
  0xa9   :  { %v47_v13 = vpop.xlane.xlu0 %46 }
  0xaa   :  { %v136_v15 = vadd.f32 %v190_v14, %v47_v13 }
  0xed   :  { %v201_v16 = vpop.f32.mrb[0].mxu0 }
  0xee   :  { %v138_v17 = vmul.f32 2.0, %v201_v16  ;;  %v120_v18 = vpop.f32.mrb[1].mxu0 }
  0xef   :  { %v137_v20 = vmul.f32 2.0, %v120_v18 }
  0xf0   :  { %v140_v21 = vsub.f32 %v136_v15, %v138_v17 }
  0xf1   :  { %v139_v22 = vsub.f32 %v135_v19, %v137_v20 }
  0xf2   :  { %v142_v23 = vmax.f32 %v140_v21, 0.0 }
  0xf3   :  { %v141_v24 = vmax.f32 %v139_v22, 0.0 }
  0xf4   :  { %213 = vrsqrt.f32 %v142_v23  ;;  %vm152_vm1 = vcmp.eq.f32.partialorder %v142_v23, inf  ;;  %v155_v30 = vand.u32 2147483648, %v142_v23  ;;  %vm154_vm3 = vcmp.eq.f32.partialorder %v142_v23, 0.0 }
  0xf5   :  { %215 = vrsqrt.f32 %v141_v24  ;;  %vm145_vm2 = vcmp.eq.f32.partialorder %v141_v24, inf  ;;  %v148_v31 = vand.u32 2147483648, %v141_v24  ;;  %vm147_vm4 = vcmp.eq.f32.partialorder %v141_v24, 0.0 }
  0xfe   :  { %v214_v26 = vpop.eup %213 }
  0xff   :  { %v216_v27 = vpop.eup %215  ;;  %v151_v28 = vmul.f32 %v214_v26, %v142_v23 }
 0x100   :  { %v144_v29 = vmul.f32 %v216_v27, %v141_v24 }
 0x101   :  { %v153_v32 = vsel %vm152_vm1, %v142_v23, %v151_v28 }
 0x102   :  { %v146_v33 = vsel %vm145_vm2, %v141_v24, %v144_v29  ;;  %v156_v35 = vsel %vm154_vm3, %v155_v30, %v153_v32 }
 0x103   :  { %v149_v36 = vsel %vm147_vm4, %v148_v31, %v146_v33  ;;  %v168_v37 = vmul.f32 %v165_v34, %v156_v35 }
 0x104   :  { %v167_v38 = vmul.f32 %v160_v25, %v149_v36 }
 0x105   :  { %170 = vst [vmem:[#allocation5 + $0x8] sm:$0xff] %v168_v37 }
 0x106   :  { %169 = vst [vmem:[#allocation5] sm:$0xff] %v167_v38 }
 0x107   :  { %250 = shalt.err (!%p247_p12)
}
 0x108   :  { %s251_s14 = scalar_lea.hbm %s348_s4, 256 }
 0x109   :  { %p252_p13 = scmp.ne.s32.totalorder %s348_s4, %s251_s14  ;;  %p255_p0 = scmp.lt.u32.totalorder %s251_s14, %s348_s4 }
 0x10b   :  { %p257_p1 = pnand %p255_p0, %p252_p13 }
 0x10d   :  { %260 = shalt.err (!%p257_p1)
}
 0x10e   :  { %182 = dma.vmem_to_hbm [thread:$0]  %s177_s3, 256, %s348_s4, [#allocation4], %s266_s25, %s266_s25, %s267_s26  }
 0x10f   :  { %263 = dma.done.wait [#allocation4], 256  }
 0x110   :  { %264 = vsyncadd [#allocation4], 4294967040 }
 0x111   :  { %186 = vsyncpa [#allocation3], 1 }
 0x112   :  { %187 = vsyncpa [#allocation4], 1 }

</bundles_post_ra>
